<compile_context>
chip_gen: v7x
topology: tpu7x:2x2x1
jax: 0.10.0
libtpu: 0.0.40
codegen_flags: <defaults>
</compile_context>

<pallas_src>
import functools
import math

import jax
import jax.numpy as jnp
from jax import lax
from jax.experimental import pallas as pl
from jax.experimental.pallas import tpu as pltpu


def _fused_gated_tcn_kernel(*refs, dilations):
    """refs = (x_ref, w0_ref, b0_ref, w1_ref, b1_ref, ..., o_ref).

    x_ref : (1, Cin, L)    activation tile, L = TH*W lanes (h-major, w-minor)
    w_ref : (4, Cout, Cin) per-layer weights, [filter_tap0, filter_tap1,
                                               gate_tap0,   gate_tap1]
    b_ref : (2, Cout, 1)   per-layer biases   [filter, gate]
    o_ref : (1, Cout, L)   same lane layout as the input
    """
    x_ref, o_ref = refs[0], refs[-1]
    wb_refs = refs[1:-1]

    x = x_ref[0]                                   # (Cin, L); lane = h*W + w
    for layer, d in enumerate(dilations):
        w_r = wb_refs[2 * layer]                   # (4, Cout, Cin)
        b_r = wb_refs[2 * layer + 1]               # (2, Cout, 1)

        # Second tap: x shifted left by `d` lanes, zero-padded at the tail.
        # Shifted-in / row-crossing lanes only feed output columns outside the
        # valid receptive field (sliced off by the wrapper), so no masking.
        pad = jnp.zeros((x.shape[0], d), dtype=x.dtype)
        x_sh = jnp.concatenate([x[:, d:], pad], axis=1)        # (Cin, L)

        # Filter / gate as separate outputs; tap contributions accumulated in
        # f32 (no channel concat, no lane slicing of the gate half).
        zf = (jnp.dot(w_r[0], x, preferred_element_type=jnp.float32)
              + jnp.dot(w_r[1], x_sh, preferred_element_type=jnp.float32)
              + b_r[0])
        zg = (jnp.dot(w_r[2], x, preferred_element_type=jnp.float32)
              + jnp.dot(w_r[3], x_sh, preferred_element_type=jnp.float32)
              + b_r[1])
        x = jnp.tanh(zf) * jax.nn.sigmoid(zg)      # (Cout, L), lane-dense

    o_ref[0] = x.astype(o_ref.dtype)


def _pick_h_tile(H, W, C, itemsize=4, max_block_bytes=1 << 20):
    """Image rows per grid step; the activation block is (1, C, TH*W).

    Whole image if it fits the byte budget; otherwise the largest TH whose
    lane count TH*W is a multiple of 128 (required for a non-full lane block)
    within the budget.  The grid uses cdiv, so TH need not divide H.
    """
    if C * H * W * itemsize <= max_block_bytes:
        return H
    g = 128 // math.gcd(128, W)        # TH granularity for 128-aligned lanes
    if H < g:
        return H
    th = (max_block_bytes // (C * W * itemsize)) // g * g
    th = max(g, min(th, (H // g) * g))
    return th


def gated_tcn_forward(x_nchw, params, kernel_size=2):
    """Pallas-backed gated_TCN forward.  x_nchw: (B, C, H, W) float32."""
    assert kernel_size == 2  # TODO(synk): generalize tap count for kernel_size > 2
    B, C, H, W = x_nchw.shape

    dilations = []
    d = 1
    for _ in params:
        dilations.append(d)
        d *= 2
    receptive = sum(dl * (kernel_size - 1) for dl in dilations)
    w_final = W - receptive
    if w_final <= 0:
        raise ValueError(f"input width {W} <= receptive field {receptive}")

    cout_final = params[-1]["filter_w"].shape[0]
    L = H * W
    x3 = x_nchw.reshape(B, C, L)       # free minor-dim merge; stays NCHW order

    # Pack per-layer weights (4, Cout, Cin) and biases (2, Cout, 1).
    packed, wb_specs = [], []
    for p in params:
        w_l = jnp.stack([p["filter_w"][:, :, 0, 0], p["filter_w"][:, :, 0, 1],
                         p["gate_w"][:, :, 0, 0], p["gate_w"][:, :, 0, 1]])
        b_l = jnp.stack([p["filter_b"], p["gate_b"]])[:, :, None]
        packed += [w_l, b_l]
        wb_specs += [
            pl.BlockSpec(w_l.shape, lambda b, j: (0, 0, 0)),
            pl.BlockSpec(b_l.shape, lambda b, j: (0, 0, 0)),
        ]

    th = _pick_h_tile(H, W, C, itemsize=x3.dtype.itemsize)
    lt = th * W
    grid = (B, pl.cdiv(H, th))

    in_specs = [pl.BlockSpec((1, C, lt), lambda b, j: (b, 0, j))] + wb_specs
    out_spec = pl.BlockSpec((1, cout_final, lt), lambda b, j: (b, 0, j))

    flops = 2 * B * H * W * sum(
        2 * kernel_size * p["filter_w"].shape[0] * p["filter_w"].shape[1]
        for p in params)
    trans = 2 * B * H * W * sum(p["filter_w"].shape[0] for p in params)
    bytes_accessed = (x3.size * x3.dtype.itemsize
                      + B * cout_final * L * 4
                      + sum(int(w.size) * w.dtype.itemsize for w in packed))

    kernel = functools.partial(_fused_gated_tcn_kernel,
                               dilations=tuple(dilations))
    y3 = pl.pallas_call(
        kernel,
        grid=grid,
        out_shape=jax.ShapeDtypeStruct((B, cout_final, L), jnp.float32),
        in_specs=in_specs,
        out_specs=out_spec,
        compiler_params=pltpu.CompilerParams(
            dimension_semantics=("parallel", "parallel"),
            vmem_limit_bytes=32 << 20),
        cost_estimate=pl.CostEstimate(flops=flops, transcendentals=trans,
                                      bytes_accessed=bytes_accessed),
    )(x3, *packed)

    # (B, Cout, H, W) -> keep only the valid receptive-field columns.
    return y3.reshape(B, cout_final, H, W)[:, :, :, :w_final]


def reference_forward(x_nchw, params, kernel_size=2):
    """Pure-JAX reference matching torch Conv2d((1,K), dilation=d) semantics."""
    x = x_nchw
    dilation = 1
    for p in params:
        w_out = x.shape[3] - dilation * (kernel_size - 1)

        def conv(xx, w, bias):
            t0 = jnp.einsum('bchw,oc->bohw', xx[:, :, :, 0:w_out],
                            w[:, :, 0, 0], precision=lax.Precision.HIGHEST)
            t1 = jnp.einsum('bchw,oc->bohw',
                            xx[:, :, :, dilation:dilation + w_out],
                            w[:, :, 0, 1], precision=lax.Precision.HIGHEST)
            return t0 + t1 + bias[None, :, None, None]

        f = jnp.tanh(conv(x, p["filter_w"], p["filter_b"]))
        g = jax.nn.sigmoid(conv(x, p["gate_w"], p["gate_b"]))
        x = f * g
        dilation *= 2
    return x


def init_params(key, residual_channels=32, dilation_channels=32,
                kernel_size=2, layers=2):
    params = []
    scale = 1.0 / jnp.sqrt(residual_channels * kernel_size)
    cin = residual_channels
    for _ in range(layers):
        key, kf, kfb, kg, kgb = jax.random.split(key, 5)
        params.append({
            "filter_w": scale * jax.random.normal(
                kf, (dilation_channels, cin, 1, kernel_size), dtype=jnp.float32),
            "filter_b": scale * jax.random.normal(
                kfb, (dilation_channels,), dtype=jnp.float32),
            "gate_w": scale * jax.random.normal(
                kg, (dilation_channels, cin, 1, kernel_size), dtype=jnp.float32),
            "gate_b": scale * jax.random.normal(
                kgb, (dilation_channels,), dtype=jnp.float32),
        })
        cin = dilation_channels
    return params


if __name__ == "__main__":
    key = jax.random.PRNGKey(0)
    key, kx = jax.random.split(key)

    B, C, H, W = 2, 32, 3, 16  # NCHW; C matches residual_channels=32
    x = jax.random.normal(kx, (B, C, H, W), dtype=jnp.float32)
    params = init_params(key, residual_channels=C, dilation_channels=C,
                         kernel_size=2, layers=2)

    fwd = jax.jit(gated_tcn_forward)
    out = jax.block_until_ready(fwd(x, params))

    ref = reference_forward(x, params)
    assert out.shape == (B, C, H, W - 3), out.shape
    max_err = float(jnp.max(jnp.abs(out - ref)))
    assert jnp.allclose(out, ref, atol=3e-5, rtol=3e-5), max_err

    print("KERNEL_OK")
</pallas_src>

<mosaic_0001>
module attributes {stable_mosaic.version = 11 : i64} {
  func.func @_fused_gated_tcn_kernel(%arg0: i32, %arg1: i32, %arg2: memref<1x32x48xf32, #tpu.memory_space<vmem>>, %arg3: memref<4x32x32xf32, #tpu.memory_space<vmem>>, %arg4: memref<2x32x1xf32, #tpu.memory_space<vmem>>, %arg5: memref<4x32x32xf32, #tpu.memory_space<vmem>>, %arg6: memref<2x32x1xf32, #tpu.memory_space<vmem>>, %arg7: memref<1x32x48xf32, #tpu.memory_space<vmem>>) attributes {dimension_semantics = [#tpu.dimension_semantics<parallel>, #tpu.dimension_semantics<parallel>], iteration_bounds = array<i64: 2, 1>, scalar_prefetch = 0 : i64, scratch_operands = 0 : i64, tpu.core_type = #tpu.core_type<tc>, window_params = [{transform_indices = @transform_0, window_bounds = array<i64: 1, 32, 48>}, {pipeline_mode = #tpu.pipeline_mode<synchronous>, transform_indices = @transform_1, window_bounds = array<i64: 4, 32, 32>}, {pipeline_mode = #tpu.pipeline_mode<synchronous>, transform_indices = @transform_2, window_bounds = array<i64: 2, 32, 1>}, {pipeline_mode = #tpu.pipeline_mode<synchronous>, transform_indices = @transform_3, window_bounds = array<i64: 4, 32, 32>}, {pipeline_mode = #tpu.pipeline_mode<synchronous>, transform_indices = @transform_4, window_bounds = array<i64: 2, 32, 1>}, {transform_indices = @transform_5, window_bounds = array<i64: 1, 32, 48>}]} {
    %c0 = arith.constant 0 : index
    %c0_0 = arith.constant 0 : index
    %c0_1 = arith.constant 0 : index
    %0 = vector.load %arg2[%c0, %c0_0, %c0_1] : memref<1x32x48xf32, #tpu.memory_space<vmem>>, vector<1x32x48xf32>
    %1 = vector.shape_cast %0 : vector<1x32x48xf32> to vector<32x48xf32>
    %cst = arith.constant 0.000000e+00 : f32
    %2 = vector.broadcast %cst : f32 to vector<32x1xf32>
    %3 = vector.extract_strided_slice %1 {offsets = [0, 1], sizes = [32, 47], strides = [1, 1]} : vector<32x48xf32> to vector<32x47xf32>
    %4 = tpu.concatenate %3, %2 in 1 : vector<32x47xf32>, vector<32x1xf32> -> vector<32x48xf32>
    %c0_2 = arith.constant 0 : index
    %c0_3 = arith.constant 0 : index
    %c0_4 = arith.constant 0 : index
    %5 = vector.load %arg3[%c0_2, %c0_3, %c0_4] : memref<4x32x32xf32, #tpu.memory_space<vmem>>, vector<1x32x32xf32>
    %6 = vector.shape_cast %5 : vector<1x32x32xf32> to vector<32x32xf32>
    %cst_5 = arith.constant dense<0.000000e+00> : vector<32x48xf32>
    %7 = tpu.matmul %6, %1, %cst_5 {dimension_numbers = #tpu.dot_dimension_numbers<[1], [0], [0], [1], [0, 0, 1, 1], [], []>} : vector<32x32xf32>, vector<32x48xf32>, vector<32x48xf32> -> vector<32x48xf32>
    %c1 = arith.constant 1 : index
    %c0_6 = arith.constant 0 : index
    %c0_7 = arith.constant 0 : index
    %8 = vector.load %arg3[%c1, %c0_6, %c0_7] : memref<4x32x32xf32, #tpu.memory_space<vmem>>, vector<1x32x32xf32>
    %9 = vector.shape_cast %8 : vector<1x32x32xf32> to vector<32x32xf32>
    %cst_8 = arith.constant dense<0.000000e+00> : vector<32x48xf32>
    %10 = tpu.matmul %9, %4, %cst_8 {dimension_numbers = #tpu.dot_dimension_numbers<[1], [0], [0], [1], [0, 0, 1, 1], [], []>} : vector<32x32xf32>, vector<32x48xf32>, vector<32x48xf32> -> vector<32x48xf32>
    %11 = arith.addf %7, %10 : vector<32x48xf32>
    %c0_9 = arith.constant 0 : index
    %c0_10 = arith.constant 0 : index
    %c0_11 = arith.constant 0 : index
    %12 = vector.load %arg4[%c0_9, %c0_10, %c0_11] : memref<2x32x1xf32, #tpu.memory_space<vmem>>, vector<1x32x1xf32>
    %13 = vector.shape_cast %12 : vector<1x32x1xf32> to vector<32x1xf32>
    %14 = vector.broadcast %13 : vector<32x1xf32> to vector<32x48xf32>
    %15 = arith.addf %11, %14 : vector<32x48xf32>
    %c2 = arith.constant 2 : index
    %c0_12 = arith.constant 0 : index
    %c0_13 = arith.constant 0 : index
    %16 = vector.load %arg3[%c2, %c0_12, %c0_13] : memref<4x32x32xf32, #tpu.memory_space<vmem>>, vector<1x32x32xf32>
    %17 = vector.shape_cast %16 : vector<1x32x32xf32> to vector<32x32xf32>
    %cst_14 = arith.constant dense<0.000000e+00> : vector<32x48xf32>
    %18 = tpu.matmul %17, %1, %cst_14 {dimension_numbers = #tpu.dot_dimension_numbers<[1], [0], [0], [1], [0, 0, 1, 1], [], []>} : vector<32x32xf32>, vector<32x48xf32>, vector<32x48xf32> -> vector<32x48xf32>
    %c3 = arith.constant 3 : index
    %c0_15 = arith.constant 0 : index
    %c0_16 = arith.constant 0 : index
    %19 = vector.load %arg3[%c3, %c0_15, %c0_16] : memref<4x32x32xf32, #tpu.memory_space<vmem>>, vector<1x32x32xf32>
    %20 = vector.shape_cast %19 : vector<1x32x32xf32> to vector<32x32xf32>
    %cst_17 = arith.constant dense<0.000000e+00> : vector<32x48xf32>
    %21 = tpu.matmul %20, %4, %cst_17 {dimension_numbers = #tpu.dot_dimension_numbers<[1], [0], [0], [1], [0, 0, 1, 1], [], []>} : vector<32x32xf32>, vector<32x48xf32>, vector<32x48xf32> -> vector<32x48xf32>
    %22 = arith.addf %18, %21 : vector<32x48xf32>
    %c1_18 = arith.constant 1 : index
    %c0_19 = arith.constant 0 : index
    %c0_20 = arith.constant 0 : index
    %23 = vector.load %arg4[%c1_18, %c0_19, %c0_20] : memref<2x32x1xf32, #tpu.memory_space<vmem>>, vector<1x32x1xf32>
    %24 = vector.shape_cast %23 : vector<1x32x1xf32> to vector<32x1xf32>
    %25 = vector.broadcast %24 : vector<32x1xf32> to vector<32x48xf32>
    %26 = arith.addf %22, %25 : vector<32x48xf32>
    %27 = math.tanh %15 : vector<32x48xf32>
    %28 = arith.negf %26 : vector<32x48xf32>
    %29 = math.exp %28 : vector<32x48xf32>
    %cst_21 = arith.constant 1.000000e+00 : f32
    %30 = vector.broadcast %cst_21 : f32 to vector<32x48xf32>
    %31 = arith.addf %30, %29 : vector<32x48xf32>
    %32 = arith.divf %30, %31 : vector<32x48xf32>
    %33 = arith.mulf %27, %32 : vector<32x48xf32>
    %cst_22 = arith.constant 0.000000e+00 : f32
    %34 = vector.broadcast %cst_22 : f32 to vector<32x2xf32>
    %35 = vector.extract_strided_slice %33 {offsets = [0, 2], sizes = [32, 46], strides = [1, 1]} : vector<32x48xf32> to vector<32x46xf32>
    %36 = tpu.concatenate %35, %34 in 1 : vector<32x46xf32>, vector<32x2xf32> -> vector<32x48xf32>
    %c0_23 = arith.constant 0 : index
    %c0_24 = arith.constant 0 : index
    %c0_25 = arith.constant 0 : index
    %37 = vector.load %arg5[%c0_23, %c0_24, %c0_25] : memref<4x32x32xf32, #tpu.memory_space<vmem>>, vector<1x32x32xf32>
    %38 = vector.shape_cast %37 : vector<1x32x32xf32> to vector<32x32xf32>
    %cst_26 = arith.constant dense<0.000000e+00> : vector<32x48xf32>
    %39 = tpu.matmul %38, %33, %cst_26 {dimension_numbers = #tpu.dot_dimension_numbers<[1], [0], [0], [1], [0, 0, 1, 1], [], []>} : vector<32x32xf32>, vector<32x48xf32>, vector<32x48xf32> -> vector<32x48xf32>
    %c1_27 = arith.constant 1 : index
    %c0_28 = arith.constant 0 : index
    %c0_29 = arith.constant 0 : index
    %40 = vector.load %arg5[%c1_27, %c0_28, %c0_29] : memref<4x32x32xf32, #tpu.memory_space<vmem>>, vector<1x32x32xf32>
    %41 = vector.shape_cast %40 : vector<1x32x32xf32> to vector<32x32xf32>
    %cst_30 = arith.constant dense<0.000000e+00> : vector<32x48xf32>
    %42 = tpu.matmul %41, %36, %cst_30 {dimension_numbers = #tpu.dot_dimension_numbers<[1], [0], [0], [1], [0, 0, 1, 1], [], []>} : vector<32x32xf32>, vector<32x48xf32>, vector<32x48xf32> -> vector<32x48xf32>
    %43 = arith.addf %39, %42 : vector<32x48xf32>
    %c0_31 = arith.constant 0 : index
    %c0_32 = arith.constant 0 : index
    %c0_33 = arith.constant 0 : index
    %44 = vector.load %arg6[%c0_31, %c0_32, %c0_33] : memref<2x32x1xf32, #tpu.memory_space<vmem>>, vector<1x32x1xf32>
    %45 = vector.shape_cast %44 : vector<1x32x1xf32> to vector<32x1xf32>
    %46 = vector.broadcast %45 : vector<32x1xf32> to vector<32x48xf32>
    %47 = arith.addf %43, %46 : vector<32x48xf32>
    %c2_34 = arith.constant 2 : index
    %c0_35 = arith.constant 0 : index
    %c0_36 = arith.constant 0 : index
    %48 = vector.load %arg5[%c2_34, %c0_35, %c0_36] : memref<4x32x32xf32, #tpu.memory_space<vmem>>, vector<1x32x32xf32>
    %49 = vector.shape_cast %48 : vector<1x32x32xf32> to vector<32x32xf32>
    %cst_37 = arith.constant dense<0.000000e+00> : vector<32x48xf32>
    %50 = tpu.matmul %49, %33, %cst_37 {dimension_numbers = #tpu.dot_dimension_numbers<[1], [0], [0], [1], [0, 0, 1, 1], [], []>} : vector<32x32xf32>, vector<32x48xf32>, vector<32x48xf32> -> vector<32x48xf32>
    %c3_38 = arith.constant 3 : index
    %c0_39 = arith.constant 0 : index
    %c0_40 = arith.constant 0 : index
    %51 = vector.load %arg5[%c3_38, %c0_39, %c0_40] : memref<4x32x32xf32, #tpu.memory_space<vmem>>, vector<1x32x32xf32>
    %52 = vector.shape_cast %51 : vector<1x32x32xf32> to vector<32x32xf32>
    %cst_41 = arith.constant dense<0.000000e+00> : vector<32x48xf32>
    %53 = tpu.matmul %52, %36, %cst_41 {dimension_numbers = #tpu.dot_dimension_numbers<[1], [0], [0], [1], [0, 0, 1, 1], [], []>} : vector<32x32xf32>, vector<32x48xf32>, vector<32x48xf32> -> vector<32x48xf32>
    %54 = arith.addf %50, %53 : vector<32x48xf32>
    %c1_42 = arith.constant 1 : index
    %c0_43 = arith.constant 0 : index
    %c0_44 = arith.constant 0 : index
    %55 = vector.load %arg6[%c1_42, %c0_43, %c0_44] : memref<2x32x1xf32, #tpu.memory_space<vmem>>, vector<1x32x1xf32>
    %56 = vector.shape_cast %55 : vector<1x32x1xf32> to vector<32x1xf32>
    %57 = vector.broadcast %56 : vector<32x1xf32> to vector<32x48xf32>
    %58 = arith.addf %54, %57 : vector<32x48xf32>
    %59 = math.tanh %47 : vector<32x48xf32>
    %60 = arith.negf %58 : vector<32x48xf32>
    %61 = math.exp %60 : vector<32x48xf32>
    %cst_45 = arith.constant 1.000000e+00 : f32
    %62 = vector.broadcast %cst_45 : f32 to vector<32x48xf32>
    %63 = arith.addf %62, %61 : vector<32x48xf32>
    %64 = arith.divf %62, %63 : vector<32x48xf32>
    %65 = arith.mulf %59, %64 : vector<32x48xf32>
    %c0_46 = arith.constant 0 : index
    %c0_47 = arith.constant 0 : index
    %c0_48 = arith.constant 0 : index
    %66 = vector.load %arg7[%c0_46, %c0_47, %c0_48] : memref<1x32x48xf32, #tpu.memory_space<vmem>>, vector<1x32x48xf32>
    %67 = vector.shape_cast %66 : vector<1x32x48xf32> to vector<32x48xf32>
    %68 = vector.shape_cast %65 : vector<32x48xf32> to vector<1x32x48xf32>
    tpu.vector_store %arg7[%c0_46, %c0_47, %c0_48], %68 {strides = array<i32>} : memref<1x32x48xf32, #tpu.memory_space<vmem>>, vector<1x32x48xf32>,
    return
  }
  func.func @transform_0(%arg0: i32, %arg1: i32) -> (i32, i32, i32) {
    %c0_i32 = arith.constant 0 : i32
    %c0_i32_0 = arith.constant 0 : i32
    return %arg0, %c0_i32, %arg1 : i32, i32, i32
  }
  func.func @transform_1(%arg0: i32, %arg1: i32) -> (i32, i32, i32) {
    %c0_i32 = arith.constant 0 : i32
    %c0_i32_0 = arith.constant 0 : i32
    %c0_i32_1 = arith.constant 0 : i32
    %c0_i32_2 = arith.constant 0 : i32
    return %c0_i32, %c0_i32_0, %c0_i32_1 : i32, i32, i32
  }
  func.func @transform_2(%arg0: i32, %arg1: i32) -> (i32, i32, i32) {
    %c0_i32 = arith.constant 0 : i32
    %c0_i32_0 = arith.constant 0 : i32
    %c0_i32_1 = arith.constant 0 : i32
    %c0_i32_2 = arith.constant 0 : i32
    return %c0_i32, %c0_i32_0, %c0_i32_1 : i32, i32, i32
  }
  func.func @transform_3(%arg0: i32, %arg1: i32) -> (i32, i32, i32) {
    %c0_i32 = arith.constant 0 : i32
    %c0_i32_0 = arith.constant 0 : i32
    %c0_i32_1 = arith.constant 0 : i32
    %c0_i32_2 = arith.constant 0 : i32
    return %c0_i32, %c0_i32_0, %c0_i32_1 : i32, i32, i32
  }
  func.func @transform_4(%arg0: i32, %arg1: i32) -> (i32, i32, i32) {
    %c0_i32 = arith.constant 0 : i32
    %c0_i32_0 = arith.constant 0 : i32
    %c0_i32_1 = arith.constant 0 : i32
    %c0_i32_2 = arith.constant 0 : i32
    return %c0_i32, %c0_i32_0, %c0_i32_1 : i32, i32, i32
  }
  func.func @transform_5(%arg0: i32, %arg1: i32) -> (i32, i32, i32) {
    %c0_i32 = arith.constant 0 : i32
    %c0_i32_0 = arith.constant 0 : i32
    return %arg0, %c0_i32, %arg1 : i32, i32, i32
  }
}

</mosaic_0001>

<bundles_post_ra>
// kernel: gated_tcn_forward.1
= control target key start
LH: loop header
LB: loop body
LE: loop exit
PB: predicated region body
PF: predicated region fallthrough
CT: control target
= control target key end

     0   :  { %s1910_s18 = smov 0   ;;  %s1912_s19 = smov 0   ;;  %s2126_s0 = inlined_call_operand.vmem [shape: f32[2,32,48], index: 0, kind: input, shape index: {}]   ;;  %s2127_s1 = inlined_call_operand.vmem [shape: f32[4,32,32], index: 1, kind: input, shape index: {}]   ;;  %s2128_s2 = inlined_call_operand.vmem [shape: f32[2,32,1], index: 2, kind: input, shape index: {}]   ;;  %s2129_s3 = inlined_call_operand.vmem [shape: f32[4,32,32], index: 3, kind: input, shape index: {}]   ;;  %s2130_s4 = inlined_call_operand.vmem [shape: f32[2,32,1], index: 4, kind: input, shape index: {}]   ;;  %s2131_s5 = inlined_call_operand.vmem [shape: f32[2,32,48], index: 5, kind: output, shape index: {}]  }
   0x1   :  { %s1914_s20 = smov 0  }
   0x2 LB: > { %s27_s21 = sadd.s32 1, %s1871_s19  ;;  %p1387_p0 = scmp.ge.s32.totalorder %s1875_s20, 1  ;;  %s1875_s20 = sphi %s1914_s20, %s15_s20   ;;  %s1871_s19 = sphi %s1912_s19, %s2133_s19   ;;  %s1867_s18 = sphi %s1910_s18, %s2132_s18  }
   0x3   : > { %p29_p1 = scmp.ge.s32.totalorder %s27_s21, 2  ;;  %p206_p2 = scmp.lt.s32.totalorder %s1875_s20, 3 }
   0x5   : > { %s2135_s21 = smov (%p29_p1, %s27_s21), 0  ;;  %p207_p3 = pnand %p1387_p0, %p206_p2 }
   0x6   : > { %p240_p4 = scmp.lt.s32.totalorder (!%p207_p3), %s1867_s18, 1  ;;  %v1392_v0 = vld [vmem:[%s2127_s1 + $0x20] sm:$0xff] (!%p207_p3)  ;;  %vm290_vm0 = vcmask (!%p207_p3), 261120   ;;  %s1877_s30 = smov (!%p207_p3), 127   ;;  %v1878_v11 = vmov (!%p207_p3), 0   ;;  %v1430_v12 = vld [vmem:[%s2128_s2 + $0x30] sm:$0xff] (!%p207_p3) }
   0x7   : > { %210 = sbr.rel (%p207_p3) target bundleno = 783 (0x30f), region = 40  ;;  %v1412_v1 = vld [vmem:[%s2127_s1 + $0x60] sm:$0xff] (!%p207_p3)  ;;  %1556 = vmatprep.mubr.msk.f32.mxu0 (!%p207_p3), %vm290_vm0, %v1392_v0  ;;  %1793 = vset.pattern.permute.xlu1 (!%p207_p3), %v1878_v11  ;;  %v1429_v13 = vld [vmem:[%s2128_s2 + $0x28] sm:$0xff] (!%p207_p3)  ;;  %v1431_v15 = vld [vmem:[%s2128_s2 + $0x38] sm:$0xff] (!%p207_p3)  ;;  %vm276_vm1 = vcmask (!%p207_p3), 384000   ;;  %s1879_s14 = smov (!%p207_p3), 126  }
   0x8   : > { %1584 = vmatprep.mubr.msk.f32.mxu1 (!%p207_p3), %vm290_vm0, %v1412_v1  ;;  %v1428_v10 = vld [vmem:[%s2128_s2 + $0x20] sm:$0xff] (!%p207_p3)  ;;  %1794 = vset.pattern.permute.xlu0 (!%p207_p3), %v1878_v11  ;;  %v486_v14 = vld [vmem:[%s2128_s2 + $0x8] sm:$0xff] (!%p207_p3)  ;;  %v488_v16 = vld [vmem:[%s2128_s2 + $0x18] sm:$0xff] (!%p207_p3)  ;;  %vm794_vm3 = vcmask (!%p207_p3), 375808   ;;  %vm1295_vm5 = vcmask (!%p207_p3), 392192  }
   0x9   : > { %724 = vperm.xlu1 (!%p207_p3), %1793, %v1428_v10   ;;  %v485_v17 = vld [vmem:[%s2128_s2] sm:$0xff] (!%p207_p3)  ;;  %v487_v18 = vld [vmem:[%s2128_s2 + $0x10] sm:$0xff] (!%p207_p3)  ;;  %vm1661_vm2 = vmpackc.low (!%p207_p3), %vm276_vm1, %vm276_vm1 }
   0xa   : > { %v1393_v27 = vld [vmem:[%s2127_s1 + $0x28] sm:$0xff] (!%p207_p3)  ;;  %v1394_v29 = vld [vmem:[%s2127_s1 + $0x30] sm:$0xff] (!%p207_p3)  ;;  %v1395_v31 = vld [vmem:[%s2127_s1 + $0x38] sm:$0xff] (!%p207_p3) }
   0xb   : > { %v1413_v28 = vld [vmem:[%s2127_s1 + $0x68] sm:$0xff] (!%p207_p3)  ;;  %v1414_v30 = vld [vmem:[%s2127_s1 + $0x70] sm:$0xff] (!%p207_p3)  ;;  %v1415_v32 = vld [vmem:[%s2127_s1 + $0x78] sm:$0xff] (!%p207_p3) }
   0xc   : > { %v281_v33 = vld [vmem:[%s2127_s1] sm:$0xff] (!%p207_p3)  ;;  %v282_v35 = vld [vmem:[%s2127_s1 + $0x8] sm:$0xff] (!%p207_p3)  ;;  %v283_v37 = vld [vmem:[%s2127_s1 + $0x10] sm:$0xff] (!%p207_p3) }
   0xd   : > { %729 = vperm.xlu1 (!%p207_p3), %1793, %v1429_v13   ;;  %v1408_v34 = vld [vmem:[%s2127_s1 + $0x40] sm:$0xff] (!%p207_p3)  ;;  %v1409_v36 = vld [vmem:[%s2127_s1 + $0x48] sm:$0xff] (!%p207_p3)  ;;  %v1410_v38 = vld [vmem:[%s2127_s1 + $0x50] sm:$0xff] (!%p207_p3) }
   0xe   : > { %s2137_s18 = smov (!%p240_p4, %s1867_s18), 1  ;;  %v284_v39 = vld [vmem:[%s2127_s1 + $0x18] sm:$0xff]  ;;  %vm1701_vm4 = vmpackc.low %vm794_vm3, %vm794_vm3 }
   0xf   : > { %s1482_s22 = sshll.u32 %s2137_s18, 5  ;;  %v1411_v40 = vld [vmem:[%s2127_s1 + $0x58] sm:$0xff] }
  0x10   : > { %s247_s25 = scalar_lea.vmem %s2126_s0, %s1482_s22  ;;  %s255_s26 = scalar_lea.vmem %s2131_s5, %s1482_s22 }
  0x11   : > { %v256_v2 = vld [vmem:[%s247_s25] sm:$0xff]  ;;  %v257_v3 = vld [vmem:[%s247_s25 + $0x8] sm:$0xff]  ;;  %v258_v4 = vld [vmem:[%s247_s25 + $0x10] sm:$0xff]  ;;  %739 = vperm.xlu1 %1793, %v1431_v15  }
  0x12   : > { %v1783_v5 = vpack.i.bf16 %v257_v3, %v256_v2  ;;  %v1672_v6 = vpack.c.bf16 %v257_v3, %v256_v2  ;;  %v259_v7 = vld [vmem:[%s247_s25 + $0x18] sm:$0xff] }
  0x13   : > { %v1676_v8 = vpack.c.bf16 %v259_v7, %v258_v4  ;;  %v1788_v9 = vpack.i.bf16 %v259_v7, %v258_v4 }
  0x14   : > { %1784 = vrot.lane.b32.xlu0 %v1783_v5, %s1877_s30 }
  0x15   : > { %491 = vperm.xlu1 %1793, %v485_v17  }
  0x18   : > { %1789 = vrot.lane.b32.xlu0 %v1788_v9, %s1877_s30 }
  0x19   : > { %501 = vperm.xlu1 %1793, %v487_v18  }
  0x1c   : > { %734 = vperm.xlu0 %1794, %v1430_v12  }
  0x20   : > { %496 = vperm.xlu0 %1794, %v486_v14  }
  0x24   : > { %506 = vperm.xlu0 %1794, %v488_v16  }
  0x86   : > { %v1785_v19 = vpop.permute.xlu0 %1784 }
  0x87   : > { %v1787_v20 = vunpack.i.h.bf16 %v1785_v19  ;;  %v1786_v21 = vunpack.i.l.bf16 %v1785_v19 }
  0x88   : > { %v725_v41 = vpop.permute.xlu1 %724 }
  0x89   : > { %v1660_v22 = vpack.c.bf16 %v1787_v20, %v1786_v21  ;;  %v1436_v21 = vld [vmem:[%s2129_s3 + $0x20] sm:$0xff] }
  0x8a   : > { %v1790_v23 = vpop.permute.xlu0 %1789 }
  0x8b   : > { %v1792_v24 = vunpack.i.h.bf16 %v1790_v23  ;;  %v1791_v25 = vunpack.i.l.bf16 %v1790_v23  ;;  %1662 = vmatprep.subr.msk.bf16.mxu0 %vm1661_vm2, %v1660_v22  ;;  %1682 = vmatprep.subr.msk.bf16.mxu1 %vm1661_vm2, %v1660_v22 }
  0x8c   : > { %1665 = vmatpush3.bf16.msk.msra.mxu0 %vm1661_vm2, %v1660_v22  ;;  %1685 = vmatpush3.bf16.msk.msra.mxu1 %vm1661_vm2, %v1660_v22  ;;  %v730_v42 = vpop.permute.xlu1 %729  ;;  %v1456_v22 = vld [vmem:[%s2129_s3 + $0x60] sm:$0xff] }
  0x8d   : > { %v1666_v26 = vpack.c.bf16 %v1792_v24, %v1791_v25 }
  0x8f   : > { %1668 = vmatprep.subr.msk.bf16.mxu0 %vm1661_vm2, %v1666_v26  ;;  %1688 = vmatprep.subr.msk.bf16.mxu1 %vm1661_vm2, %v1666_v26 }
  0x90   : > { %1671 = vmatpush3.bf16.msk.msra.mxu0 %vm1661_vm2, %v1666_v26  ;;  %1691 = vmatpush3.bf16.msk.msra.mxu1 %vm1661_vm2, %v1666_v26  ;;  %v740_v50 = vpop.permute.xlu1 %739 }
  0x91   : > { %1673 = vmatprep.subr.bf16.mxu0 %v1672_v6  ;;  %1693 = vmatprep.subr.bf16.mxu1 %v1672_v6 }
  0x93   : > { %1557 = vmatmul.mubr.msk.f32.vlgmr.msra.gmra.mrb[0].mxu0 %vm290_vm0, %v1393_v27  ;;  %1585 = vmatmul.mubr.msk.f32.vlgmr.msra.gmra.mrb[0].mxu1 %vm290_vm0, %v1413_v28 }
  0x94   : > { %1675 = vmatpush3.bf16.msra.mxu0 %v1672_v6  ;;  %1695 = vmatpush3.bf16.msra.mxu1 %v1672_v6  ;;  %v492_v62 = vpop.permute.xlu1 %491 }
  0x95   : > { %1559 = vmatprep.mubr.msk.f32.mxu0 %vm290_vm0, %v1394_v29  ;;  %1587 = vmatprep.mubr.msk.f32.mxu1 %vm290_vm0, %v1414_v30  ;;  %v1472_v29 = vld [vmem:[%s2130_s4 + $0x20] sm:$0xff] }
  0x96   : > { %1677 = vmatprep.subr.bf16.mxu0 %v1676_v8  ;;  %1697 = vmatprep.subr.bf16.mxu1 %v1676_v8 }
  0x97   : > { %1560 = vmatmul.mubr.msk.f32.gmra.mrb[2].mxu0 %vm290_vm0, %v1395_v31  ;;  %1588 = vmatmul.mubr.msk.f32.gmra.mrb[2].mxu1 %vm290_vm0, %v1415_v32  ;;  %v1474_v32 = vld [vmem:[%s2130_s4 + $0x30] sm:$0xff] }
  0x98   : > { %1679 = vmatpush3.bf16.msra.mxu0 %v1676_v8  ;;  %1699 = vmatpush3.bf16.msra.mxu1 %v1676_v8  ;;  %v502_v4 = vpop.permute.xlu1 %501 }
  0x99   : > { %1570 = vmatprep.mubr.msk.f32.mxu0 %vm290_vm0, %v281_v33  ;;  %1598 = vmatprep.mubr.msk.f32.mxu1 %vm290_vm0, %v1408_v34  ;;  %v1473_v33 = vld [vmem:[%s2130_s4 + $0x28] sm:$0xff]  ;;  %v1002_v34 = vld [vmem:[%s2130_s4] sm:$0xff] }
  0x9b   : > { %1571 = vmatmul.mubr.msk.f32.vlgmr.msra.gmra.mrb[0].mxu0 %vm290_vm0, %v282_v35  ;;  %1599 = vmatmul.mubr.msk.f32.vlgmr.msra.gmra.mrb[0].mxu1 %vm290_vm0, %v1409_v36  ;;  %v735_v43 = vpop.permute.xlu0 %734  ;;  %v1475_v35 = vld [vmem:[%s2130_s4 + $0x38] sm:$0xff]  ;;  %v1004_v36 = vld [vmem:[%s2130_s4 + $0x10] sm:$0xff] }
  0x9c   : > { %1573 = vmatprep.mubr.msk.f32.mxu0 %vm290_vm0, %v283_v37  ;;  %1601 = vmatprep.mubr.msk.f32.mxu1 %vm290_vm0, %v1410_v38  ;;  %v1003_v37 = vld [vmem:[%s2130_s4 + $0x8] sm:$0xff]  ;;  %v1005_v38 = vld [vmem:[%s2130_s4 + $0x18] sm:$0xff] }
  0x9f   : > { %1574 = vmatmul.mubr.msk.f32.gmra.mrb[2].mxu0 %vm290_vm0, %v284_v39  ;;  %1602 = vmatmul.mubr.msk.f32.gmra.mrb[2].mxu1 %vm290_vm0, %v1411_v40  ;;  %v497_v59 = vpop.permute.xlu0 %496 }
  0xa0   : > { %1612 = vmatprep.mubr.msk.f32.mxu0 %vm290_vm0, %v1436_v21  ;;  %1640 = vmatprep.mubr.msk.f32.mxu1 %vm290_vm0, %v1456_v22 }
  0xa3   : > { %v507_v1 = vpop.permute.xlu0 %506 }
 0x16e   : > { %v1572_v44 = vpop.f32.mrb[0].mxu0  ;;  %v1600_v45 = vpop.f32.mrb[0].mxu1 }
 0x16f   : > { %v743_v46 = vadd.f32 %v1600_v45, %v730_v42  ;;  %v466_v47 = vpop.f32.mrb[1].mxu0  ;;  %v698_v48 = vpop.f32.mrb[1].mxu1  ;;  %v510_v63 = vadd.f32 %v1572_v44, %v497_v59  ;;  %v802_v59 = vld [vmem:[%s2129_s3 + $0x18] sm:$0xff] }
 0x170   : > { %v742_v49 = vadd.f32 %v725_v41, %v698_v48  ;;  %v509_v0 = vadd.f32 %v492_v62, %v466_v47  ;;  %v1437_v47 = vld [vmem:[%s2129_s3 + $0x28] sm:$0xff] }
 0x171   : > { %v1433_v51 = vmul.f32 -1.442695, %v743_v46  ;;  %v1457_v48 = vld [vmem:[%s2129_s3 + $0x68] sm:$0xff] }
 0x172   : > { %v1432_v52 = vmul.f32 -1.442695, %v742_v49  ;;  %v1575_v53 = vpop.f32.mrb[2].mxu0  ;;  %v1603_v54 = vpop.f32.mrb[2].mxu1  ;;  %v1438_v49 = vld [vmem:[%s2129_s3 + $0x30] sm:$0xff] }
 0x173   : > { %1805 = vpow2.f32 %v1433_v51  ;;  %v745_v55 = vadd.f32 %v1603_v54, %v740_v50  ;;  %v476_v56 = vpop.f32.mrb[3].mxu0  ;;  %v708_v57 = vpop.f32.mrb[3].mxu1  ;;  %v512_v6 = vadd.f32 %v1575_v53, %v507_v1  ;;  %v1458_v50 = vld [vmem:[%s2129_s3 + $0x70] sm:$0xff]  ;;  %v1439_v51 = vld [vmem:[%s2129_s3 + $0x38] sm:$0xff]  ;;  %v799_v53 = vld [vmem:[%s2129_s3] sm:$0xff] }
 0x174   : > { %1807 = vpow2.f32 %v1432_v52  ;;  %v744_v58 = vadd.f32 %v735_v43, %v708_v57  ;;  %v511_v8 = vadd.f32 %v502_v4, %v476_v56  ;;  %v1459_v52 = vld [vmem:[%s2129_s3 + $0x78] sm:$0xff]  ;;  %v1452_v54 = vld [vmem:[%s2129_s3 + $0x40] sm:$0xff]  ;;  %v1453_v56 = vld [vmem:[%s2129_s3 + $0x48] sm:$0xff] }
 0x175   : > { %v1435_v60 = vmul.f32 -1.442695, %v745_v55  ;;  %v800_v55 = vld [vmem:[%s2129_s3 + $0x8] sm:$0xff]  ;;  %v801_v57 = vld [vmem:[%s2129_s3 + $0x10] sm:$0xff] }
 0x176   : > { %v1434_v61 = vmul.f32 -1.442695, %v744_v58  ;;  %v1454_v58 = vld [vmem:[%s2129_s3 + $0x50] sm:$0xff] }
 0x177   : > { %1809 = vpow2.f32 %v1435_v60  ;;  %v1455_v60 = vld [vmem:[%s2129_s3 + $0x58] sm:$0xff] }
 0x178   : > { %1811 = vpow2.f32 %v1434_v61 }
 0x179   : > { %1813 = vtanh.f32 %v510_v63 }
 0x17a   : > { %1815 = vtanh.f32 %v509_v0 }
 0x17d   : > { %v1806_v2 = vpop.eup %1805 }
 0x17e   : > { %v1808_v3 = vpop.eup %1807  ;;  %v763_v5 = vadd.f32 1.0, %v1806_v2 }
 0x17f   : > { %v762_v7 = vadd.f32 1.0, %v1808_v3 }
 0x180   : > { %1817 = vrcp.f32 %v763_v5 }
 0x181   : > { %v1810_v9 = vpop.eup %1809  ;;  %1819 = vrcp.f32 %v762_v7 }
 0x182   : > { %v1812_v10 = vpop.eup %1811  ;;  %v765_v11 = vadd.f32 1.0, %v1810_v9  ;;  %1821 = vtanh.f32 %v512_v6 }
 0x183   : > { %1823 = vtanh.f32 %v511_v8  ;;  %v764_v12 = vadd.f32 1.0, %v1812_v10  ;;  %v1814_v13 = vpop.eup %1813 }
 0x184   : > { %1825 = vrcp.f32 %v765_v11  ;;  %v1816_v14 = vpop.eup %1815 }
 0x185   : > { %1827 = vrcp.f32 %v764_v12 }
 0x18a   : > { %v1818_v15 = vpop.eup %1817 }
 0x18b   : > { %v1820_v16 = vpop.eup %1819  ;;  %v775_v17 = vmul.f32 %v1818_v15, %v1814_v13 }
 0x18c   : > { %v1822_v18 = vpop.eup %1821  ;;  %v774_v19 = vmul.f32 %v1820_v16, %v1816_v14 }
 0x18d   : > { %v1824_v20 = vpop.eup %1823 }
 0x18e   : > { %v1826_v23 = vpop.eup %1825  ;;  %v1795_v24 = vpack.i.bf16 %v775_v17, %v774_v19  ;;  %v1712_v25 = vpack.c.bf16 %v775_v17, %v774_v19 }
 0x18f   : > { %v1828_v26 = vpop.eup %1827  ;;  %v777_v27 = vmul.f32 %v1826_v23, %v1822_v18 }
 0x190   : > { %1796 = vrot.lane.b32.xlu1 %v1795_v24, %s1879_s14  ;;  %v776_v28 = vmul.f32 %v1828_v26, %v1824_v20 }
 0x192   : > { %v1800_v30 = vpack.i.bf16 %v777_v27, %v776_v28  ;;  %v1716_v31 = vpack.c.bf16 %v777_v27, %v776_v28 }
 0x194   : > { %1241 = vperm.xlu1 %1793, %v1472_v29   ;;  %1801 = vrot.lane.b32.xlu0 %v1800_v30, %s1879_s14 }
 0x198   : > { %1251 = vperm.xlu1 %1793, %v1474_v32   ;;  %1246 = vperm.xlu0 %1794, %v1473_v33  }
 0x19c   : > { %1008 = vperm.xlu1 %1793, %v1002_v34   ;;  %1256 = vperm.xlu0 %1794, %v1475_v35  }
 0x1a0   : > { %1018 = vperm.xlu1 %1793, %v1004_v36   ;;  %1013 = vperm.xlu0 %1794, %v1003_v37  }
 0x1a4   : > { %1023 = vperm.xlu0 %1794, %v1005_v38  }
 0x202   : > { %v1797_v39 = vpop.permute.xlu1 %1796 }
 0x203   : > { %v1799_v40 = vunpack.i.h.bf16 %v1797_v39  ;;  %v1798_v41 = vunpack.i.l.bf16 %v1797_v39 }
 0x205   : > { %v1700_v42 = vpack.c.bf16 %v1799_v40, %v1798_v41 }
 0x206   : > { %v1802_v43 = vpop.permute.xlu0 %1801 }
 0x207   : > { %v1804_v44 = vunpack.i.h.bf16 %v1802_v43  ;;  %v1803_v45 = vunpack.i.l.bf16 %v1802_v43  ;;  %1702 = vmatprep.subr.msk.bf16.mxu0 %vm1701_vm4, %v1700_v42  ;;  %1722 = vmatprep.subr.msk.bf16.mxu1 %vm1701_vm4, %v1700_v42 }
 0x208   : > { %1705 = vmatpush3.bf16.msk.msra.mxu0 %vm1701_vm4, %v1700_v42  ;;  %1725 = vmatpush3.bf16.msk.msra.mxu1 %vm1701_vm4, %v1700_v42 }
 0x209   : > { %v1706_v46 = vpack.c.bf16 %v1804_v44, %v1803_v45 }
 0x20b   : > { %1708 = vmatprep.subr.msk.bf16.mxu0 %vm1701_vm4, %v1706_v46  ;;  %1728 = vmatprep.subr.msk.bf16.mxu1 %vm1701_vm4, %v1706_v46 }
 0x20c   : > { %1711 = vmatpush3.bf16.msk.msra.mxu0 %vm1701_vm4, %v1706_v46  ;;  %1731 = vmatpush3.bf16.msk.msra.mxu1 %vm1701_vm4, %v1706_v46 }
 0x20d   : > { %1713 = vmatprep.subr.bf16.mxu0 %v1712_v25  ;;  %1733 = vmatprep.subr.bf16.mxu1 %v1712_v25 }
 0x20f   : > { %1613 = vmatmul.mubr.msk.f32.vlgmr.msra.gmra.mrb[4].mxu0 %vm290_vm0, %v1437_v47  ;;  %1641 = vmatmul.mubr.msk.f32.vlgmr.msra.gmra.mrb[4].mxu1 %vm290_vm0, %v1457_v48 }
 0x210   : > { %1715 = vmatpush3.bf16.msra.mxu0 %v1712_v25  ;;  %1735 = vmatpush3.bf16.msra.mxu1 %v1712_v25 }
 0x211   : > { %1717 = vmatprep.subr.bf16.mxu0 %v1716_v31  ;;  %1737 = vmatprep.subr.bf16.mxu1 %v1716_v31 }
 0x212   : > { %1615 = vmatprep.mubr.msk.f32.mxu0 %vm290_vm0, %v1438_v49  ;;  %1643 = vmatprep.mubr.msk.f32.mxu1 %vm290_vm0, %v1458_v50 }
 0x213   : > { %1616 = vmatmul.mubr.msk.f32.gmra.mrb[6].mxu0 %vm290_vm0, %v1439_v51  ;;  %1644 = vmatmul.mubr.msk.f32.gmra.mrb[6].mxu1 %vm290_vm0, %v1459_v52  ;;  %v1242_v61 = vpop.permute.xlu1 %1241 }
 0x214   : > { %1719 = vmatpush3.bf16.msra.mxu0 %v1716_v31  ;;  %1739 = vmatpush3.bf16.msra.mxu1 %v1716_v31 }
 0x215   : > { %1626 = vmatprep.mubr.msk.f32.mxu0 %vm290_vm0, %v799_v53  ;;  %1654 = vmatprep.mubr.msk.f32.mxu1 %vm290_vm0, %v1452_v54 }
 0x217   : > { %1627 = vmatmul.mubr.msk.f32.vlgmr.msra.gmra.mrb[4].mxu0 %vm290_vm0, %v800_v55  ;;  %1655 = vmatmul.mubr.msk.f32.vlgmr.msra.gmra.mrb[4].mxu1 %vm290_vm0, %v1453_v56  ;;  %v1247_v62 = vpop.permute.xlu0 %1246  ;;  %v1252_v5 = vpop.permute.xlu1 %1251 }
 0x218   : > { %1629 = vmatprep.mubr.msk.f32.mxu0 %vm290_vm0, %v801_v57  ;;  %1657 = vmatprep.mubr.msk.f32.mxu1 %vm290_vm0, %v1454_v58 }
 0x21b   : > { %1630 = vmatmul.mubr.msk.f32.gmra.mrb[6].mxu0 %vm290_vm0, %v802_v59  ;;  %1658 = vmatmul.mubr.msk.f32.gmra.mrb[6].mxu1 %vm290_vm0, %v1455_v60  ;;  %v1257_v6 = vpop.permute.xlu0 %1256  ;;  %v1009_v18 = vpop.permute.xlu1 %1008 }
 0x21f   : > { %v1014_v17 = vpop.permute.xlu0 %1013  ;;  %v1019_v24 = vpop.permute.xlu1 %1018 }
 0x223   : > { %v1024_v22 = vpop.permute.xlu0 %1023 }
 0x2ea   : > { %v1628_v63 = vpop.f32.mrb[4].mxu0  ;;  %v1656_v0 = vpop.f32.mrb[4].mxu1 }
 0x2eb   : > { %v1260_v1 = vadd.f32 %v1656_v0, %v1247_v62  ;;  %v983_v2 = vpop.f32.mrb[5].mxu0  ;;  %v1215_v3 = vpop.f32.mrb[5].mxu1  ;;  %v1027_v19 = vadd.f32 %v1628_v63, %v1014_v17 }
 0x2ec   : > { %v1259_v4 = vadd.f32 %v1242_v61, %v1215_v3  ;;  %v1026_v20 = vadd.f32 %v1009_v18, %v983_v2 }
 0x2ed   : > { %v1477_v7 = vmul.f32 -1.442695, %v1260_v1 }
 0x2ee   : > { %v1476_v8 = vmul.f32 -1.442695, %v1259_v4  ;;  %v1631_v9 = vpop.f32.mrb[6].mxu0  ;;  %v1659_v10 = vpop.f32.mrb[6].mxu1 }
 0x2ef   : > { %1829 = vpow2.f32 %v1477_v7  ;;  %v1262_v11 = vadd.f32 %v1659_v10, %v1257_v6  ;;  %v993_v12 = vpop.f32.mrb[7].mxu0  ;;  %v1225_v13 = vpop.f32.mrb[7].mxu1  ;;  %v1029_v26 = vadd.f32 %v1631_v9, %v1024_v22 }
 0x2f0   : > { %1831 = vpow2.f32 %v1476_v8  ;;  %v1261_v14 = vadd.f32 %v1252_v5, %v1225_v13  ;;  %v1028_v28 = vadd.f32 %v1019_v24, %v993_v12 }
 0x2f1   : > { %v1479_v15 = vmul.f32 -1.442695, %v1262_v11 }
 0x2f2   : > { %v1478_v16 = vmul.f32 -1.442695, %v1261_v14 }
 0x2f3   : > { %1833 = vpow2.f32 %v1479_v15 }
 0x2f4   : > { %1835 = vpow2.f32 %v1478_v16 }
 0x2f5   : > { %1837 = vtanh.f32 %v1027_v19 }
 0x2f6   : > { %1839 = vtanh.f32 %v1026_v20 }
 0x2f9   : > { %v1830_v21 = vpop.eup %1829 }
 0x2fa   : > { %v1832_v23 = vpop.eup %1831  ;;  %v1280_v25 = vadd.f32 1.0, %v1830_v21 }
 0x2fb   : > { %v1279_v27 = vadd.f32 1.0, %v1832_v23 }
 0x2fc   : > { %1841 = vrcp.f32 %v1280_v25 }
 0x2fd   : > { %v1834_v29 = vpop.eup %1833  ;;  %1843 = vrcp.f32 %v1279_v27 }
 0x2fe   : > { %v1836_v30 = vpop.eup %1835  ;;  %1845 = vtanh.f32 %v1029_v26  ;;  %v1282_v31 = vadd.f32 1.0, %v1834_v29 }
 0x2ff   : > { %1847 = vtanh.f32 %v1028_v28  ;;  %v1281_v32 = vadd.f32 1.0, %v1836_v30  ;;  %v1838_v33 = vpop.eup %1837 }
 0x300   : > { %1849 = vrcp.f32 %v1282_v31  ;;  %v1840_v34 = vpop.eup %1839 }
 0x301   : > { %1851 = vrcp.f32 %v1281_v32 }
 0x306   : > { %v1842_v35 = vpop.eup %1841 }
 0x307   : > { %v1844_v36 = vpop.eup %1843  ;;  %v1292_v37 = vmul.f32 %v1842_v35, %v1838_v33 }
 0x308   : > { %v1846_v38 = vpop.eup %1845  ;;  %v1291_v39 = vmul.f32 %v1844_v36, %v1840_v34 }
 0x309   : > { %v1848_v40 = vpop.eup %1847  ;;  %1297 = vst.msk [vmem:[%s255_s26 + $0x8] sm:$0xff] %vm1295_vm5, %v1292_v37 }
 0x30a   : > { %v1850_v41 = vpop.eup %1849  ;;  %1296 = vst.msk [vmem:[%s255_s26] sm:$0xff] %vm1295_vm5, %v1291_v39 }
 0x30b   : > { %v1852_v42 = vpop.eup %1851  ;;  %v1294_v43 = vmul.f32 %v1850_v41, %v1846_v38 }
 0x30c   : > { %v1293_v44 = vmul.f32 %v1852_v42, %v1848_v40 }
 0x30d   : > { %1299 = vst.msk [vmem:[%s255_s26 + $0x18] sm:$0xff] %vm1295_vm5, %v1294_v43 }
 0x30e   : > { %1298 = vst.msk [vmem:[%s255_s26 + $0x10] sm:$0xff] %vm1295_vm5, %v1293_v44 }
 0x30f PF: > { %s15_s20 = sadd.s32 1, %s1875_s20   ;;  %s2132_s18 = smov %s1871_s19 }
 0x310   : > { %p12_p5 = scmp.ge.s32.totalorder %s15_s20, 4   ;;  %s2133_s19 = smov %s2135_s21 }
 0x312   :  { %14 = sbr.rel (!%p12_p5) target bundleno = 2 (0x2), region = 78 }

</bundles_post_ra>
